<compile_context>
chip_gen: v6e
topology: v6e:2x2x1
jax: 0.10.0
libtpu: 0.0.40
codegen_flags: <defaults>
</compile_context>

<pallas_src>
import functools
import math

import jax
import jax.numpy as jnp
from jax.experimental import pallas as pl
from jax.experimental.pallas import tpu as pltpu

LN_EPS = 1e-5

_VMEM_BUDGET_BYTES = 40 << 20   # conservative across v5e/v6e/v7x
_VMEM_LIMIT_BYTES = 48 << 20    # < 64 MiB/core physical on v7x


def _round_up(v, m):
    return (v + m - 1) // m * m


# --------------------------------------------------------------------------- #
# Kernel
# --------------------------------------------------------------------------- #
def _tide_resblock_kernel(*refs, out_p, output_dim, use_layer_norm):
    if use_layer_norm:
        (x_ref, wcat_ref, bcat_ref, w2_ref, b2_ref,
         gamma_ref, beta_ref, o_ref) = refs
    else:
        x_ref, wcat_ref, bcat_ref, w2_ref, b2_ref, o_ref = refs
        gamma_ref = beta_ref = None

    x = x_ref[...]  # native dtype straight to the MXU (f32 accumulation below)

    # Single fused MXU pass for the two matmuls that share x:
    #   hs = [x @ Ws_pad | x @ W1] + [bs_pad | b1]    (width out_p + hidden)
    hs = jnp.dot(x, wcat_ref[...], preferred_element_type=jnp.float32) + bcat_ref[...]
    skip_out = hs[:, :out_p]                    # lane-aligned split (out_p % 128 == 0)
    h = jnp.maximum(hs[:, out_p:], 0.0)         # ReLU on hidden pre-activation

    dense_out = jnp.dot(h, w2_ref[...], preferred_element_type=jnp.float32) + b2_ref[...]

    # TODO(synk): dropout is identity here (inference semantics, training=False).
    out = dense_out + skip_out                  # padded lanes are exactly zero

    if use_layer_norm:
        # One-pass stats. Padded columns of `out` are exactly 0 (zero-padded
        # W2/Ws/biases), so sums over out_p equal sums over the real output_dim.
        inv_d = jnp.float32(1.0 / output_dim)
        s1 = jnp.sum(out, axis=-1, keepdims=True)
        s2 = jnp.sum(out * out, axis=-1, keepdims=True)
        mean = s1 * inv_d
        var = s2 * inv_d - mean * mean
        out = (out - mean) * jax.lax.rsqrt(var + LN_EPS)
        out = out * gamma_ref[...] + beta_ref[...]   # pads of gamma/beta are 0

    o_ref[...] = out.astype(o_ref.dtype)


# --------------------------------------------------------------------------- #
# Host-side helpers
# --------------------------------------------------------------------------- #
def prepare_params(params):
    """Fuse / pad weights once (call at init time, not per forward).

    Weight layout [in_features, out_features].  Returns a dict holding:
      w_cat = [Ws_pad | W1] : [in, out_p + hidden]
      b_cat = [bs_pad | b1] : [1,  out_p + hidden]
      w2_p, b2_p, gamma_p, beta_p padded to out_p columns (zeros in the pad).
    """
    w1, b1, w2, b2, ws, bs, gamma, beta = params
    input_dim, hidden = w1.shape
    output_dim = w2.shape[1]
    out_p = _round_up(output_dim, 128)
    dt = w1.dtype

    ws_p = jnp.zeros((input_dim, out_p), dt).at[:, :output_dim].set(ws)
    bs_p = jnp.zeros((1, out_p), dt).at[:, :output_dim].set(bs)
    w_cat = jnp.concatenate([ws_p, w1], axis=1)   # [in, out_p + hidden]
    b_cat = jnp.concatenate([bs_p, b1], axis=1)   # [1,  out_p + hidden]

    w2_p = jnp.zeros((hidden, out_p), dt).at[:, :output_dim].set(w2)
    b2_p = jnp.zeros((1, out_p), dt).at[:, :output_dim].set(b2)
    gamma_p = jnp.zeros((1, out_p), dt).at[:, :output_dim].set(gamma)
    beta_p = jnp.zeros((1, out_p), dt).at[:, :output_dim].set(beta)

    return dict(
        w_cat=w_cat, b_cat=b_cat, w2=w2_p, b2=b2_p, gamma=gamma_p, beta=beta_p,
        input_dim=int(input_dim), hidden=int(hidden),
        output_dim=int(output_dim), out_p=int(out_p),
    )


def _choose_row_tile(n, input_dim, hidden, out_p, dsize, row_tile_max):
    """VMEM-budgeted row tile + generation-aware grid shaping."""
    # Per-row bytes: double-buffered x / out tiles + f32 in-kernel intermediates
    # (hs, h, dense/out).
    per_row = 2 * input_dim * dsize + 2 * out_p * dsize + (3 * out_p + 2 * hidden) * 4
    # Resident weights/biases (assume default double-buffering -> 2x).
    fixed = 2 * dsize * (input_dim * (out_p + hidden)      # w_cat
                         + hidden * out_p                  # w2
                         + (out_p + hidden) + 4 * out_p)   # b_cat, b2, gamma, beta
    avail = max(_VMEM_BUDGET_BYTES - fixed, 8 * per_row)
    budget_rows = max(8, (avail // per_row) // 8 * 8)

    if n >= 8 * 512:
        # Large batch: keep >= 8 grid steps so both v7x TensorCores get >= 4
        # pipelined steps (DMA hidden behind compute).
        cap = _round_up(pl.cdiv(n, 8), 8)
    else:
        # Small batch: one resident tile (best for single-TC v5e/v6e; avoids
        # per-step pipeline overhead).
        cap = _round_up(max(n, 1), 8)
    return int(max(8, min(budget_rows, cap, row_tile_max)))


def tide_resblock(x, prepared, *, use_layer_norm=True, row_tile_max=2048):
    """x: [..., input_dim] -> [..., output_dim]; `prepared` from prepare_params."""
    input_dim = prepared["input_dim"]
    hidden = prepared["hidden"]
    output_dim = prepared["output_dim"]
    out_p = prepared["out_p"]

    orig_shape = x.shape
    n = math.prod(orig_shape[:-1])
    x2d = x.reshape(n, input_dim)

    dsize = jnp.dtype(x.dtype).itemsize
    tile = _choose_row_tile(n, input_dim, hidden, out_p, dsize, row_tile_max)
    n_pad = _round_up(n, tile)
    if n_pad != n:
        x2d = jnp.pad(x2d, ((0, n_pad - n), (0, 0)))

    kernel = functools.partial(
        _tide_resblock_kernel,
        out_p=out_p, output_dim=output_dim, use_layer_norm=use_layer_norm)

    full = lambda i: (0, 0)  # constant-index weight/bias blocks
    in_specs = [
        pl.BlockSpec((tile, input_dim), lambda i: (i, 0)),           # x rows
        pl.BlockSpec((input_dim, out_p + hidden), full),             # [Ws_pad|W1]
        pl.BlockSpec((1, out_p + hidden), full),                     # [bs_pad|b1]
        pl.BlockSpec((hidden, out_p), full),                         # W2 (padded cols)
        pl.BlockSpec((1, out_p), full),                              # b2
    ]
    operands = [x2d, prepared["w_cat"], prepared["b_cat"],
                prepared["w2"], prepared["b2"]]
    if use_layer_norm:
        in_specs += [pl.BlockSpec((1, out_p), full),                 # gamma
                     pl.BlockSpec((1, out_p), full)]                 # beta
        operands += [prepared["gamma"], prepared["beta"]]

    out2d = pl.pallas_call(
        kernel,
        out_shape=jax.ShapeDtypeStruct((n_pad, out_p), x.dtype),
        grid_spec=pltpu.PrefetchScalarGridSpec(
            num_scalar_prefetch=0,
            grid=(n_pad // tile,),
            in_specs=in_specs,
            out_specs=pl.BlockSpec((tile, out_p), lambda i: (i, 0)),  # lane-dense
        ),
        compiler_params=pltpu.CompilerParams(
            dimension_semantics=("parallel",),
            vmem_limit_bytes=_VMEM_LIMIT_BYTES),
    )(*operands)

    out2d = out2d[:n, :output_dim]
    return out2d.reshape(orig_shape[:-1] + (output_dim,))


# --------------------------------------------------------------------------- #
# Init + pure-JAX reference
# --------------------------------------------------------------------------- #
def init_params(key, input_dim, hidden, output_dim, dtype=jnp.float32):
    """nn.Linear-style init (uniform +-1/sqrt(fan_in)); weights [in, out]."""
    ks = jax.random.split(key, 6)

    def lin(kw, kb, fan_in, fan_out):
        bound = 1.0 / jnp.sqrt(fan_in)
        w = jax.random.uniform(kw, (fan_in, fan_out), dtype, -bound, bound)
        b = jax.random.uniform(kb, (1, fan_out), dtype, -bound, bound)
        return w, b

    w1, b1 = lin(ks[0], ks[1], input_dim, hidden)
    w2, b2 = lin(ks[2], ks[3], hidden, output_dim)
    ws, bs = lin(ks[4], ks[5], input_dim, output_dim)
    gamma = jnp.ones((1, output_dim), dtype)
    beta = jnp.zeros((1, output_dim), dtype)
    return (w1, b1, w2, b2, ws, bs, gamma, beta)


def tide_resblock_ref(x, params, use_layer_norm=True):
    w1, b1, w2, b2, ws, bs, gamma, beta = params
    h = jnp.maximum(x @ w1 + b1, 0.0)
    dense_out = h @ w2 + b2
    out = dense_out + (x @ ws + bs)
    if use_layer_norm:
        mean = out.mean(-1, keepdims=True)
        var = ((out - mean) ** 2).mean(-1, keepdims=True)
        out = (out - mean) * jax.lax.rsqrt(var + LN_EPS) * gamma + beta
    return out


if __name__ == "__main__":
    input_dim, hidden, output_dim = 24, 32, 40
    dropout = 0.1  # identity at inference

    key = jax.random.PRNGKey(0)
    kp, kx1, kx2 = jax.random.split(key, 3)
    params = init_params(kp, input_dim, hidden, output_dim)
    prepared = prepare_params(params)   # fused/padded once, reused per call

    ok = True

    # Case 1: flattened batch divisible by 8, with LayerNorm.
    x1 = jax.random.normal(kx1, (2, 8, input_dim), jnp.float32)
    out1 = jax.block_until_ready(tide_resblock(x1, prepared, use_layer_norm=True))
    ref1 = tide_resblock_ref(x1, params, use_layer_norm=True)
    ok &= (out1.shape == (2, 8, output_dim))
    ok &= bool(jnp.allclose(out1, ref1, atol=1e-4, rtol=1e-4))

    # Case 2: ragged flattened batch (padded tail rows), no LayerNorm.
    x2 = jax.random.normal(kx2, (3, 7, input_dim), jnp.float32)
    out2 = jax.block_until_ready(tide_resblock(x2, prepared, use_layer_norm=False))
    ref2 = tide_resblock_ref(x2, params, use_layer_norm=False)
    ok &= (out2.shape == (3, 7, output_dim))
    ok &= bool(jnp.allclose(out2, ref2, atol=1e-4, rtol=1e-4))

    assert ok, "mismatch vs reference"
    print("KERNEL_OK")
</pallas_src>

<mosaic_0001>
module attributes {stable_mosaic.version = 11 : i64} {
  func.func @_tide_resblock_kernel(%arg0: i32, %arg1: memref<16x24xf32, #tpu.memory_space<vmem>>, %arg2: memref<24x160xf32, #tpu.memory_space<vmem>>, %arg3: memref<1x160xf32, #tpu.memory_space<vmem>>, %arg4: memref<32x128xf32, #tpu.memory_space<vmem>>, %arg5: memref<1x128xf32, #tpu.memory_space<vmem>>, %arg6: memref<1x128xf32, #tpu.memory_space<vmem>>, %arg7: memref<1x128xf32, #tpu.memory_space<vmem>>, %arg8: memref<16x128xf32, #tpu.memory_space<vmem>>) attributes {dimension_semantics = [#tpu.dimension_semantics<parallel>], iteration_bounds = array<i64: 1>, scalar_prefetch = 0 : i64, scratch_operands = 0 : i64, tpu.core_type = #tpu.core_type<tc>, window_params = [{transform_indices = @transform_0, window_bounds = array<i64: 16, 24>}, {pipeline_mode = #tpu.pipeline_mode<synchronous>, transform_indices = @transform_1, window_bounds = array<i64: 24, 160>}, {pipeline_mode = #tpu.pipeline_mode<synchronous>, transform_indices = @transform_2, window_bounds = array<i64: 1, 160>}, {pipeline_mode = #tpu.pipeline_mode<synchronous>, transform_indices = @transform_3, window_bounds = array<i64: 32, 128>}, {pipeline_mode = #tpu.pipeline_mode<synchronous>, transform_indices = @transform_4, window_bounds = array<i64: 1, 128>}, {pipeline_mode = #tpu.pipeline_mode<synchronous>, transform_indices = @transform_5, window_bounds = array<i64: 1, 128>}, {pipeline_mode = #tpu.pipeline_mode<synchronous>, transform_indices = @transform_6, window_bounds = array<i64: 1, 128>}, {transform_indices = @transform_7, window_bounds = array<i64: 16, 128>}]} {
    %c0 = arith.constant 0 : index
    %c0_0 = arith.constant 0 : index
    %0 = vector.load %arg1[%c0, %c0_0] : memref<16x24xf32, #tpu.memory_space<vmem>>, vector<16x24xf32>
    %c0_1 = arith.constant 0 : index
    %c0_2 = arith.constant 0 : index
    %1 = vector.load %arg2[%c0_1, %c0_2] : memref<24x160xf32, #tpu.memory_space<vmem>>, vector<24x160xf32>
    %cst = arith.constant dense<0.000000e+00> : vector<16x160xf32>
    %2 = tpu.matmul %0, %1, %cst {dimension_numbers = #tpu.dot_dimension_numbers<[1], [0], [0], [1], [0, 0, 1, 1], [], []>} : vector<16x24xf32>, vector<24x160xf32>, vector<16x160xf32> -> vector<16x160xf32>
    %c0_3 = arith.constant 0 : index
    %c0_4 = arith.constant 0 : index
    %3 = vector.load %arg3[%c0_3, %c0_4] : memref<1x160xf32, #tpu.memory_space<vmem>>, vector<1x160xf32>
    %4 = vector.broadcast %3 : vector<1x160xf32> to vector<16x160xf32>
    %5 = arith.addf %2, %4 : vector<16x160xf32>
    %6 = vector.extract_strided_slice %5 {offsets = [0, 0], sizes = [16, 128], strides = [1, 1]} : vector<16x160xf32> to vector<16x128xf32>
    %7 = vector.extract_strided_slice %5 {offsets = [0, 128], sizes = [16, 32], strides = [1, 1]} : vector<16x160xf32> to vector<16x32xf32>
    %cst_5 = arith.constant 0.000000e+00 : f32
    %8 = vector.broadcast %cst_5 : f32 to vector<16x32xf32>
    %9 = arith.maximumf %7, %8 : vector<16x32xf32>
    %c0_6 = arith.constant 0 : index
    %c0_7 = arith.constant 0 : index
    %10 = vector.load %arg4[%c0_6, %c0_7] : memref<32x128xf32, #tpu.memory_space<vmem>>, vector<32x128xf32>
    %cst_8 = arith.constant dense<0.000000e+00> : vector<16x128xf32>
    %11 = tpu.matmul %9, %10, %cst_8 {dimension_numbers = #tpu.dot_dimension_numbers<[1], [0], [0], [1], [0, 0, 1, 1], [], []>} : vector<16x32xf32>, vector<32x128xf32>, vector<16x128xf32> -> vector<16x128xf32>
    %c0_9 = arith.constant 0 : index
    %c0_10 = arith.constant 0 : index
    %12 = vector.load %arg5[%c0_9, %c0_10] : memref<1x128xf32, #tpu.memory_space<vmem>>, vector<1x128xf32>
    %13 = vector.broadcast %12 : vector<1x128xf32> to vector<16x128xf32>
    %14 = arith.addf %11, %13 : vector<16x128xf32>
    %15 = arith.addf %14, %6 : vector<16x128xf32>
    %cst_11 = arith.constant dense<0.000000e+00> : vector<16xf32>
    %16 = vector.multi_reduction <add>, %15, %cst_11 [1] : vector<16x128xf32> to vector<16xf32>
    %17 = vector.shape_cast %16 : vector<16xf32> to vector<16x1xf32>
    %18 = arith.mulf %15, %15 : vector<16x128xf32>
    %cst_12 = arith.constant dense<0.000000e+00> : vector<16xf32>
    %19 = vector.multi_reduction <add>, %18, %cst_12 [1] : vector<16x128xf32> to vector<16xf32>
    %20 = vector.shape_cast %19 : vector<16xf32> to vector<16x1xf32>
    %cst_13 = arith.constant 2.500000e-02 : f32
    %21 = vector.broadcast %cst_13 : f32 to vector<16x1xf32>
    %22 = arith.mulf %17, %21 : vector<16x1xf32>
    %cst_14 = arith.constant 2.500000e-02 : f32
    %23 = vector.broadcast %cst_14 : f32 to vector<16x1xf32>
    %24 = arith.mulf %20, %23 : vector<16x1xf32>
    %25 = arith.mulf %22, %22 : vector<16x1xf32>
    %26 = arith.subf %24, %25 : vector<16x1xf32>
    %27 = vector.broadcast %22 : vector<16x1xf32> to vector<16x128xf32>
    %28 = arith.subf %15, %27 : vector<16x128xf32>
    %cst_15 = arith.constant 9.99999974E-6 : f32
    %29 = vector.broadcast %cst_15 : f32 to vector<16x1xf32>
    %30 = arith.addf %26, %29 : vector<16x1xf32>
    %31 = math.rsqrt %30 : vector<16x1xf32>
    %32 = vector.broadcast %31 : vector<16x1xf32> to vector<16x128xf32>
    %33 = arith.mulf %28, %32 : vector<16x128xf32>
    %c0_16 = arith.constant 0 : index
    %c0_17 = arith.constant 0 : index
    %34 = vector.load %arg6[%c0_16, %c0_17] : memref<1x128xf32, #tpu.memory_space<vmem>>, vector<1x128xf32>
    %35 = vector.broadcast %34 : vector<1x128xf32> to vector<16x128xf32>
    %36 = arith.mulf %33, %35 : vector<16x128xf32>
    %c0_18 = arith.constant 0 : index
    %c0_19 = arith.constant 0 : index
    %37 = vector.load %arg7[%c0_18, %c0_19] : memref<1x128xf32, #tpu.memory_space<vmem>>, vector<1x128xf32>
    %38 = vector.broadcast %37 : vector<1x128xf32> to vector<16x128xf32>
    %39 = arith.addf %36, %38 : vector<16x128xf32>
    %c0_20 = arith.constant 0 : index
    %c0_21 = arith.constant 0 : index
    %40 = vector.load %arg8[%c0_20, %c0_21] : memref<16x128xf32, #tpu.memory_space<vmem>>, vector<16x128xf32>
    tpu.vector_store %arg8[%c0_20, %c0_21], %39 {strides = array<i32>} : memref<16x128xf32, #tpu.memory_space<vmem>>, vector<16x128xf32>,
    return
  }
  func.func @transform_0(%arg0: i32) -> (i32, i32) {
    %c0_i32 = arith.constant 0 : i32
    %c0_i32_0 = arith.constant 0 : i32
    return %arg0, %c0_i32 : i32, i32
  }
  func.func @transform_1(%arg0: i32) -> (i32, i32) {
    %c0_i32 = arith.constant 0 : i32
    %c0_i32_0 = arith.constant 0 : i32
    %c0_i32_1 = arith.constant 0 : i32
    return %c0_i32, %c0_i32_0 : i32, i32
  }
  func.func @transform_2(%arg0: i32) -> (i32, i32) {
    %c0_i32 = arith.constant 0 : i32
    %c0_i32_0 = arith.constant 0 : i32
    %c0_i32_1 = arith.constant 0 : i32
    return %c0_i32, %c0_i32_0 : i32, i32
  }
  func.func @transform_3(%arg0: i32) -> (i32, i32) {
    %c0_i32 = arith.constant 0 : i32
    %c0_i32_0 = arith.constant 0 : i32
    %c0_i32_1 = arith.constant 0 : i32
    return %c0_i32, %c0_i32_0 : i32, i32
  }
  func.func @transform_4(%arg0: i32) -> (i32, i32) {
    %c0_i32 = arith.constant 0 : i32
    %c0_i32_0 = arith.constant 0 : i32
    %c0_i32_1 = arith.constant 0 : i32
    return %c0_i32, %c0_i32_0 : i32, i32
  }
  func.func @transform_5(%arg0: i32) -> (i32, i32) {
    %c0_i32 = arith.constant 0 : i32
    %c0_i32_0 = arith.constant 0 : i32
    %c0_i32_1 = arith.constant 0 : i32
    return %c0_i32, %c0_i32_0 : i32, i32
  }
  func.func @transform_6(%arg0: i32) -> (i32, i32) {
    %c0_i32 = arith.constant 0 : i32
    %c0_i32_0 = arith.constant 0 : i32
    %c0_i32_1 = arith.constant 0 : i32
    return %c0_i32, %c0_i32_0 : i32, i32
  }
  func.func @transform_7(%arg0: i32) -> (i32, i32) {
    %c0_i32 = arith.constant 0 : i32
    %c0_i32_0 = arith.constant 0 : i32
    return %arg0, %c0_i32 : i32, i32
  }
}

</mosaic_0001>

<bundles_post_ra>
// kernel: tpu_custom_call.1
= control target key start
LH: loop header
LB: loop body
LE: loop exit
PB: predicated region body
PF: predicated region fallthrough
CT: control target
= control target key end

     0   :  { %12 = vsyncpa [#allocation3], 0  ;;  %s538_s0 = inlined_call_operand.hbm [shape: f32[16,24], index: 0, kind: input, shape index: {}]   ;;  %s539_s1 = inlined_call_operand.hbm [shape: f32[24,160], index: 1, kind: input, shape index: {}]   ;;  %s540_s2 = inlined_call_operand.vmem [shape: f32[1,160], index: 2, kind: input, shape index: {}]   ;;  %s541_s3 = inlined_call_operand.hbm [shape: f32[32,128], index: 3, kind: input, shape index: {}]   ;;  %s542_s4 = inlined_call_operand.vmem [shape: f32[1,128], index: 4, kind: input, shape index: {}]   ;;  %s543_s5 = inlined_call_operand.vmem [shape: f32[1,128], index: 5, kind: input, shape index: {}]   ;;  %s544_s6 = inlined_call_operand.vmem [shape: f32[1,128], index: 6, kind: input, shape index: {}]   ;;  %s545_s7 = inlined_call_operand.hbm [shape: f32[16,128], index: 7, kind: output, shape index: {}]  }
   0x1   :  { %13 = vsyncpa [#allocation6], 0 }
   0x2   :  { %14 = vsyncpa [#allocation4], 0  ;;  %s456_s24 = smov [#allocation5]  }
   0x3   :  { %s32_s25 = sshll.u32 %s456_s24, 4  ;;  %s33_s25 = int_to_ptr.vmem [resolvable:$true] %s32_s25 }
   0x4   :  { %s378_s26 = scalar_lea.vmem %s33_s25, 768  ;;  %p383_p1 = scmp.lt.s32.totalorder %s33_s25, %s33_s25 }
   0x5   :  { %p379_p0 = scmp.ne.s32.totalorder %s33_s25, %s378_s26  ;;  %p384_p2 = scmp.lt.s32.totalorder %s378_s26, %s378_s26 }
   0x7   :  { %p385_p3 = por %p384_p2, %p383_p1 }
   0x9   :  { %p386_p4 = pnand %p385_p3, %p379_p0 }
   0xb   :  { %389 = shalt.err (!%p386_p4)
}
   0xc   :  { %s457_s27 = smov 256   ;;  %s458_s28 = smov 16  }
   0xd   :  { %38 = dma.hbm_to_vmem [thread:$0]  %s539_s1, 768, %s33_s25, [#allocation6], %s457_s27, %s457_s27, %s458_s28  }
   0xe   :  { %s459_s8 = smov [#allocation2]  }
   0xf   :  { %s20_s9 = sshll.u32 %s459_s8, 4  ;;  %s21_s9 = int_to_ptr.vmem [resolvable:$true] %s20_s9 }
  0x10   :  { %s398_s10 = scalar_lea.vmem %s21_s9, 256  ;;  %p403_p6 = scmp.lt.s32.totalorder %s21_s9, %s21_s9 }
  0x11   :  { %p399_p5 = scmp.ne.s32.totalorder %s21_s9, %s398_s10  ;;  %p404_p7 = scmp.lt.s32.totalorder %s398_s10, %s398_s10 }
  0x13   :  { %p405_p8 = por %p404_p7, %p403_p6 }
  0x15   :  { %p406_p9 = pnand %p405_p8, %p399_p5 }
  0x17   :  { %409 = shalt.err (!%p406_p9)
}
  0x18   :  { %s460_s11 = smov 128   ;;  %s461_s12 = smov 8  }
  0x19   :  { %26 = dma.hbm_to_vmem [thread:$0]  %s538_s0, 256, %s21_s9, [#allocation3], %s460_s11, %s460_s11, %s461_s12  }
  0x1a   :  { %s462_s1 = smov [#allocation7]  }
  0x1b   :  { %s46_s15 = sshll.u32 %s462_s1, 4  ;;  %s47_s15 = int_to_ptr.vmem [resolvable:$true] %s46_s15 }
  0x1c   :  { %s418_s16 = scalar_lea.vmem %s47_s15, 512  ;;  %p423_p11 = scmp.lt.s32.totalorder %s47_s15, %s47_s15 }
  0x1d   :  { %p419_p10 = scmp.ne.s32.totalorder %s47_s15, %s418_s16  ;;  %p424_p12 = scmp.lt.s32.totalorder %s418_s16, %s418_s16 }
  0x1f   :  { %p425_p13 = por %p424_p12, %p423_p11 }
  0x21   :  { %p426_p0 = pnand %p425_p13, %p419_p10 }
  0x23   :  { %429 = shalt.err (!%p426_p0)
}
  0x24   :  { %52 = dma.hbm_to_vmem [thread:$0]  %s541_s3, 512, %s47_s15, [#allocation6], %s460_s11, %s460_s11, %s461_s12  }
  0x25   :  { %450 = dma.done.wait [#allocation3], 256  }
  0x26   :  { %451 = vsyncadd [#allocation3], 4294967040 }
  0x27   :  { %452 = dma.done.wait [#allocation6], 1280  }
  0x28   :  { %453 = vsyncadd [#allocation6], 4294966016  ;;  %v463_v0 = vmov 0.0   ;;  %v75_v1 = vld [vmem:[#allocation5 + $0x28] sm:$0xff]  ;;  %v74_v2 = vld [vmem:[#allocation5 + $0x20] sm:$0xff]  ;;  %vm88_vm0 = vcmask 195584   ;;  %v78_v13 = vlaneseq }
  0x29   :  { %159 = vmatprep.mubr.f32.mxu0 %v463_v0  ;;  %v73_v3 = vld [vmem:[#allocation5 + $0x18] sm:$0xff]  ;;  %121 = vmatprep.subr.mxu0 %v75_v1  ;;  %v72_v4 = vld [vmem:[#allocation5 + $0x10] sm:$0xff]  ;;  %v71_v5 = vld [vmem:[#allocation5 + $0x8] sm:$0xff]  ;;  %vm185_vm1 = vcmask 261120   ;;  %s464_s23 = smov [#allocation8]  }
  0x2a   :  { %122 = vmatpush1.msra.mxu0 %v74_v2  ;;  %v70_v6 = vld [vmem:[#allocation5] sm:$0xff]  ;;  %v68_v7 = vld [vmem:[#allocation2] sm:$0xff]  ;;  %v69_v8 = vld [vmem:[#allocation2 + $0x8] sm:$0xff]  ;;  %v79_v14 = vshrl.u32 %v78_v13, 7  ;;  %s320_s24 = sshll.u32 %s464_s23, 4  ;;  %s321_s24 = int_to_ptr.vmem [resolvable:$true] %s320_s24 }
  0x2b   :  { %123 = vmatprep.subr.mxu0 %v73_v3  ;;  %v177_v9 = vld [vmem:[#allocation7 + $0x18] sm:$0xff]  ;;  %v176_v10 = vld [vmem:[#allocation7 + $0x10] sm:$0xff]  ;;  %v175_v11 = vld [vmem:[#allocation7 + $0x8] sm:$0xff]  ;;  %s430_s25 = scalar_lea.vmem %s321_s24, 256  ;;  %p435_p2 = scmp.lt.s32.totalorder %s321_s24, %s321_s24 }
  0x2c   :  { %124 = vmatpush1.msra.mxu0 %v72_v4  ;;  %346 = vmatprep.subr.mxu1 %v177_v9  ;;  %v174_v12 = vld [vmem:[#allocation7] sm:$0xff]  ;;  %v84_v15 = vsub.s32 1, %v79_v14  ;;  %v80_v26 = vsub.s32 0, %v79_v14  ;;  %p431_p1 = scmp.ne.s32.totalorder %s321_s24, %s430_s25  ;;  %p436_p3 = scmp.lt.s32.totalorder %s430_s25, %s430_s25 }
  0x2d   :  { %125 = vmatprep.subr.mxu0 %v71_v5  ;;  %347 = vmatpush3.msra.mxu1 %v177_v9  ;;  %v76_v16 = vld [vmem:[%s540_s2] sm:$0x3] }
  0x2e   :  { %126 = vmatpush1.msra.mxu0 %v70_v6  ;;  %348 = vmatprep.subr.mxu1 %v176_v10  ;;  %v85_v17 = vrot.slane %v76_v16, %v84_v15  ;;  %v81_v27 = vrot.slane %v76_v16, %v80_v26  ;;  %v335_v29 = vld [vmem:[%s542_s4] ss:$0 sm:$0xff]  ;;  %p437_p4 = por %p436_p3, %p435_p2 }
  0x2f   :  { %333 = vmatmul.mubr.msk.f32.vlgmr.msra.gmra.mxu0 %vm88_vm0, %v68_v7  ;;  %349 = vmatpush3.msra.mxu1 %v176_v10  ;;  %v338_v55 = vld [vmem:[%s543_s5] ss:$0 sm:$0xff] }
  0x30   :  { %165 = vmatprep.mubr.f32.mxu0 %v463_v0  ;;  %350 = vmatprep.subr.mxu1 %v175_v11  ;;  %v339_v57 = vld [vmem:[%s544_s6] ss:$0 sm:$0xff]  ;;  %p438_p5 = pnand %p437_p4, %p431_p1 }
  0x31   :  { %351 = vmatpush3.msra.mxu1 %v175_v11 }
  0x32   :  { %352 = vmatprep.subr.mxu1 %v174_v12 }
  0x33   :  { %334 = vmatmul.mubr.msk.f32.gmra.mxu0 %vm88_vm0, %v69_v8  ;;  %353 = vmatpush3.msra.mxu1 %v174_v12 }
  0xef   :  { %v161_v18 = vpop.f32.mrf.mxu0 }
  0xf0   :  { %v162_v31 = vadd.f32 %v161_v18, %v81_v27 }
  0xf1   :  { %v163_v19 = vpop.f32.mrf.mxu0 }
  0xf2   :  { %v164_v20 = vadd.f32 %v163_v19, %v85_v17 }
  0xf3   :  { %v167_v21 = vpop.f32.mrf.mxu0 }
  0xf4   :  { %v172_v22 = vmax.f32 %v164_v20, 0.0  ;;  %v168_v34 = vadd.f32 %v167_v21, %v81_v27 }
  0xf5   :  { %v169_v23 = vpop.f32.mrf.mxu0 }
  0xf6   :  { %v170_v24 = vadd.f32 %v169_v23, %v85_v17  ;;  %354 = vmatprep.mubr.msk.f32.mxu1 %vm185_vm1, %v172_v22 }
  0xf8   :  { %v173_v25 = vmax.f32 %v170_v24, 0.0 }
  0xfa   :  { %355 = vmatmul.mubr.msk.f32.vlgmr.msra.gmra.mxu1 %vm185_vm1, %v173_v25 }
 0x1ba   :  { %v356_v28 = vpop.f32.mrf.mxu1 }
 0x1bb   :  { %v264_v32 = vadd.f32 %v356_v28, %v335_v29 }
 0x1bc   :  { %v258_v30 = vpop.f32.mrf.mxu1 }
 0x1bd   :  { %v259_v33 = vadd.f32 %v335_v29, %v258_v30  ;;  %v268_v36 = vadd.f32 %v264_v32, %v168_v34 }
 0x1bf   :  { %v267_v35 = vadd.f32 %v259_v33, %v162_v31  ;;  %v274_v38 = vmul.f32 %v268_v36, %v268_v36 }
 0x1c1   :  { %269 = vadd.xlane.f32.xlu0 %v267_v35  ;;  %v273_v37 = vmul.f32 %v267_v35, %v267_v35 }
 0x1c3   :  { %275 = vadd.xlane.f32.xlu1 %v273_v37 }
 0x1c5   :  { %271 = vadd.xlane.f32.xlu0 %v268_v36 }
 0x1c7   :  { %277 = vadd.xlane.f32.xlu1 %v274_v38 }
 0x24a   :  { %v270_v39 = vpop.xlane.xlu0 %269 }
 0x24b   :  { %v279_v40 = vmul.f32 0.025, %v270_v39 }
 0x24c   :  { %v276_v41 = vpop.xlane.xlu1 %275 }
 0x24d   :  { %v283_v42 = vmul.f32 %v279_v40, %v279_v40  ;;  %v281_v43 = vmul.f32 0.025, %v276_v41  ;;  %v287_v53 = vsub.f32 %v267_v35, %v279_v40 }
 0x24e   :  { %v272_v44 = vpop.xlane.xlu0 %271 }
 0x24f   :  { %v285_v45 = vsub.f32 %v281_v43, %v283_v42  ;;  %v280_v46 = vmul.f32 0.025, %v272_v44 }
 0x250   :  { %v278_v47 = vpop.xlane.xlu1 %277 }
 0x251   :  { %v289_v48 = vadd.f32 1e-05, %v285_v45  ;;  %v284_v49 = vmul.f32 %v280_v46, %v280_v46  ;;  %v282_v50 = vmul.f32 0.025, %v278_v47  ;;  %v288_v58 = vsub.f32 %v268_v36, %v280_v46 }
 0x253   :  { %366 = vrsqrt.f32 %v289_v48  ;;  %v286_v51 = vsub.f32 %v282_v50, %v284_v49 }
 0x255   :  { %v290_v52 = vadd.f32 1e-05, %v286_v51 }
 0x257   :  { %368 = vrsqrt.f32 %v290_v52 }
 0x260   :  { %v367_v54 = vpop.eup %366 }
 0x261   :  { %v293_v56 = vmul.f32 %v367_v54, %v287_v53 }
 0x263   :  { %v302_v59 = vmul.f32 %v338_v55, %v293_v56 }
 0x264   :  { %v369_v60 = vpop.eup %368 }
 0x265   :  { %v294_v61 = vmul.f32 %v369_v60, %v288_v58  ;;  %v311_v62 = vadd.f32 %v339_v57, %v302_v59 }
 0x267   :  { %v303_v63 = vmul.f32 %v338_v55, %v294_v61  ;;  %313 = vst [vmem:[#allocation8] sm:$0xff] %v311_v62 }
 0x269   :  { %v312_v0 = vadd.f32 %v339_v57, %v303_v63 }
 0x26b   :  { %314 = vst [vmem:[#allocation8 + $0x8] sm:$0xff] %v312_v0 }
 0x26c   :  { %441 = shalt.err (!%p438_p5)
}
 0x26d   :  { %326 = dma.vmem_to_hbm [thread:$0]  %s321_s24, 256, %s545_s7, [#allocation4], %s460_s11, %s460_s11, %s461_s12  }
 0x26e   :  { %454 = dma.done.wait [#allocation4], 256  }
 0x26f   :  { %455 = vsyncadd [#allocation4], 4294967040 }
 0x270   :  { %330 = vsyncpa [#allocation3], 1 }
 0x271   :  { %331 = vsyncpa [#allocation6], 1 }
 0x272   :  { %332 = vsyncpa [#allocation4], 1 }

</bundles_post_ra>
